<compile_context>
chip_gen: v7x
topology: tpu7x:2x2x1
jax: 0.10.0
libtpu: 0.0.40
codegen_flags: <defaults>
</compile_context>

<pallas_src>
import functools

import numpy as np

import jax
import jax.numpy as jnp
from jax.experimental import pallas as pl
from jax.experimental.pallas import tpu as pltpu


def _round_up(x, m):
    return ((x + m - 1) // m) * m


# ----------------------------- Pallas kernel ------------------------------ #
def _eacnet_kernel(x_ref, p_ref, out_ref, *, nin_raw, enum_aug, h_aug, num_out,
                   r_sel, r_w1raw, r_w1e, r_w2):
    """Fused EACNet forward, batch-in-lanes layout.

    x_ref:   (nin_raw, TB) f32; rows = [Xc feats | Xe codes (f32) | 1 | 0-pad]
    p_ref:   (R, 128) packed f32 params:
      rows [r_sel,   +enum_aug) cols [0,nin_raw): sel (enum one-hot row -> code row pick)
                                col  nin_raw     : code (class id per one-hot row, -1 pad)
      rows [r_w1raw, +h_aug)    cols [0,nin_raw) : W1_cont^T | b1 column | ones-row trick
      rows [r_w1e,   +h_aug)    cols [0,enum_aug): W1_enum^T
      rows [r_w2,    +2*num_out)cols [0,h_aug)   : head-folded W2^T | bh column
    out_ref: (2*num_out, TB) = [mu rows ; softplus(sigma2_pre) rows]
    """
    two_out = 2 * num_out
    x = x_ref[...]                                               # (nin_raw, TB)

    sel = p_ref[r_sel:r_sel + enum_aug, 0:nin_raw]               # (enum_aug, nin_raw)
    code = p_ref[r_sel:r_sel + enum_aug, nin_raw:nin_raw + 1]    # (enum_aug, 1)
    w1r = p_ref[r_w1raw:r_w1raw + h_aug, 0:nin_raw]              # (h_aug, nin_raw)
    w1e = p_ref[r_w1e:r_w1e + h_aug, 0:enum_aug]                 # (h_aug, enum_aug)
    w2 = p_ref[r_w2:r_w2 + two_out, 0:h_aug]                     # (two_out, h_aug)

    # In-kernel one-hot: spread each enum code to its vocab rows ({0,1} weights on
    # small integers -> exact regardless of matmul precision), compare to class id.
    spread = jnp.dot(sel, x, preferred_element_type=jnp.float32)   # (enum_aug, TB)
    onehot = jnp.where(spread == code, 1.0, 0.0)                   # (enum_aug, TB)

    # Encoder layer (b1 folded via the constant-ones row of x) + ReLU.
    h = jnp.maximum(
        jnp.dot(w1r, x, preferred_element_type=jnp.float32)
        + jnp.dot(w1e, onehot, preferred_element_type=jnp.float32), 0.0)  # (h_aug, TB)

    # Folded encoder layer 2 + both heads in one matmul (bh via h's constant-1 row).
    z = jnp.dot(w2, h, preferred_element_type=jnp.float32)          # (two_out, TB)

    # Stable single-exp softplus, applied to the sigma2 sublane rows only.
    sp = jnp.maximum(z, 0.0) + jnp.log1p(jnp.exp(-jnp.abs(z)))
    row = jax.lax.broadcasted_iota(jnp.int32, z.shape, 0)
    out_ref[...] = jnp.where(row < num_out, z, sp)                  # [mu ; softplus]


# --------------------------- Parameter packing ----------------------------- #
def pack_params(params, num_cont, enum_vocab, num_out):
    """Fold heads/biases into the encoder, build the in-kernel one-hot constants and
    pack everything into one (R, 128) f32 buffer with 8-aligned row blocks."""
    w1, b1, w2, b2, wmu, bmu, ws, bs = params
    num_enum = len(enum_vocab)
    enum_total = int(sum(enum_vocab))
    d_in, nh = w1.shape
    assert d_in == num_cont + enum_total
    two_out = 2 * num_out

    # Algebraic head fusion (exact up to f32 rounding).
    w_head = jnp.concatenate([wmu, ws], axis=1)          # (out_features, 2*num_out)
    b_head = jnp.concatenate([bmu, bs], axis=1)          # (1, 2*num_out)
    w2h = w2 @ w_head                                    # (nh, 2*num_out)
    bh = b2 @ w_head + b_head                            # (1, 2*num_out)

    nin_raw = _round_up(num_cont + num_enum + 1, 8)      # Xc | Xe codes | ones | pad
    enum_aug = _round_up(enum_total, 8)
    h_aug = _round_up(nh + 1, 8)

    r_sel = 0
    r_w1raw = r_sel + enum_aug
    r_w1e = r_w1raw + h_aug
    r_w2 = r_w1e + h_aug
    R = r_w2 + _round_up(two_out, 8)
    L = 128                                              # full-lane param blocks

    # One-hot builder constants.
    sel = np.zeros((enum_aug, nin_raw), np.float32)
    code = np.full((enum_aug,), -1.0, np.float32)        # -1 sentinel for pad rows
    r = 0
    for j, v in enumerate(enum_vocab):
        for k in range(v):
            sel[r, num_cont + j] = 1.0
            code[r] = float(k)
            r += 1

    w1_np = np.asarray(w1, np.float32)
    b1_np = np.asarray(b1, np.float32)
    w2h_np = np.asarray(w2h, np.float32)
    bh_np = np.asarray(bh, np.float32)

    packed = np.zeros((R, L), np.float32)
    # builder block
    packed[r_sel:r_sel + enum_aug, 0:nin_raw] = sel
    packed[r_sel:r_sel + enum_aug, nin_raw] = code
    # W1 (continuous part)^T with b1 in the ones column; extra row makes h[nh] == 1.
    ones_col = num_cont + num_enum
    packed[r_w1raw:r_w1raw + nh, 0:num_cont] = w1_np[0:num_cont, :].T
    packed[r_w1raw:r_w1raw + nh, ones_col] = b1_np[0]
    packed[r_w1raw + nh, ones_col] = 1.0                 # h row nh = relu(1) = 1
    # W1 (enum / one-hot part)^T
    packed[r_w1e:r_w1e + nh, 0:enum_total] = w1_np[num_cont:, :].T
    # Head-folded W2^T with bh in column nh (multiplies the constant-1 h row).
    packed[r_w2:r_w2 + two_out, 0:nh] = w2h_np.T
    packed[r_w2:r_w2 + two_out, nh] = bh_np[0]

    meta = (nin_raw, enum_aug, h_aug, num_out, r_sel, r_w1raw, r_w1e, r_w2)
    return jnp.asarray(packed), meta


# ------------------------------ Host wrapper ------------------------------ #
@functools.partial(jax.jit, static_argnames=("meta", "tile_b_max"))
def eacnet_forward(Xc, Xe, packed, meta, tile_b_max=8192):
    """EACNet forward.  Xc: (B, num_cont) f32, Xe: (B, num_enum) int.
    Returns (mu, sigma2), each (B, num_out)."""
    nin_raw, enum_aug, h_aug, num_out, r_sel, r_w1raw, r_w1e, r_w2 = meta
    two_out = 2 * num_out
    B, num_cont = Xc.shape
    num_enum = Xe.shape[1]
    assert num_cont + num_enum + 1 <= nin_raw

    # Batch-in-lanes raw input: [Xc | float(Xe) | 1 | 0-pad] per example, transposed.
    raw = jnp.concatenate(
        [Xc.astype(jnp.float32), Xe.astype(jnp.float32),
         jnp.ones((B, 1), jnp.float32)], axis=1)
    used = num_cont + num_enum + 1
    if used < nin_raw:
        raw = jnp.pad(raw, ((0, 0), (0, nin_raw - used)))
    x_raw = raw.T                                                # (nin_raw, B)

    # Batch tiling: multiples of 256 lanes; >= 2 grid steps once B >= 512 so the
    # parallel batch axis shards across both v7x TensorCores; capped by tile_b_max.
    tile_cap = max(256, _round_up(int(tile_b_max), 256))
    b_ceil = _round_up(B, 256)
    tile_b = min(tile_cap, max(256, _round_up(b_ceil // 2, 256)))
    b_pad = _round_up(B, tile_b)
    if b_pad != B:
        x_raw = jnp.pad(x_raw, ((0, 0), (0, b_pad - B)))

    R, L = packed.shape
    kernel = functools.partial(
        _eacnet_kernel, nin_raw=nin_raw, enum_aug=enum_aug, h_aug=h_aug,
        num_out=num_out, r_sel=r_sel, r_w1raw=r_w1raw, r_w1e=r_w1e, r_w2=r_w2)

    out = pl.pallas_call(
        kernel,
        out_shape=jax.ShapeDtypeStruct((two_out, b_pad), jnp.float32),
        grid=(b_pad // tile_b,),
        in_specs=[
            pl.BlockSpec((nin_raw, tile_b), lambda i: (0, i)),   # batch-tiled raw input
            pl.BlockSpec((R, L), lambda i: (0, 0)),              # packed params, resident
        ],
        out_specs=pl.BlockSpec((two_out, tile_b), lambda i: (0, i)),  # lane-dense output
        compiler_params=pltpu.CompilerParams(
            dimension_semantics=("parallel",)),
    )(x_raw, packed)                                             # (two_out, b_pad)

    mu = out[:num_out, :B].T
    sigma2 = out[num_out:two_out, :B].T
    return mu, sigma2


# ------------------------------- Param init -------------------------------- #
def init_linear(key, fan_in, fan_out):
    """Mimics torch.nn.Linear default init (U[-1/sqrt(fan_in), +1/sqrt(fan_in)])."""
    kw, kb = jax.random.split(key)
    bound = 1.0 / jnp.sqrt(jnp.float32(fan_in))
    w = jax.random.uniform(kw, (fan_in, fan_out), jnp.float32, -bound, bound)
    b = jax.random.uniform(kb, (1, fan_out), jnp.float32, -bound, bound)
    return w, b


def make_params(key, d_in, nhidden_eac, out_features, num_out):
    k1, k2, k3, k4 = jax.random.split(key, 4)
    w1, b1 = init_linear(k1, d_in, nhidden_eac)          # EAC encoder layer 1
    w2, b2 = init_linear(k2, nhidden_eac, out_features)  # EAC encoder layer 2
    wmu, bmu = init_linear(k3, out_features, num_out)    # self.mu
    ws, bs = init_linear(k4, out_features, num_out)      # self.sigma2[0]
    return (w1, b1, w2, b2, wmu, bmu, ws, bs)


# --------------------------- Pure-JAX reference ---------------------------- #
def eacnet_reference(Xc, Xe, enum_vocab, params):
    w1, b1, w2, b2, wmu, bmu, ws, bs = params
    Xe_oh = jnp.concatenate(
        [jax.nn.one_hot(Xe[:, j], v, dtype=jnp.float32)
         for j, v in enumerate(enum_vocab)], axis=1)
    x = jnp.concatenate([Xc.astype(jnp.float32), Xe_oh], axis=1)
    h = jnp.maximum(x @ w1 + b1, 0.0)
    feat = h @ w2 + b2
    mu = feat @ wmu + bmu
    sigma2 = jax.nn.softplus(feat @ ws + bs)
    return mu, sigma2


if __name__ == "__main__":
    # Model config (EACNet defaults): out_features=64, nhidden_eac=64,
    # nlayer_eac=1, enum_trans='onehot', output_noise=True.
    num_cont = 4
    enum_vocab = (3, 4, 5)   # 3 enum params, one-hot width = 12
    num_enum = len(enum_vocab)
    num_out = 2
    nhidden_eac = 64
    out_features = 64
    B = 8

    key = jax.random.PRNGKey(0)
    kxc, kxe, kp = jax.random.split(key, 3)

    # Inputs: Xc FloatTensor (B, num_cont), Xe LongTensor (B, num_enum)
    Xc = jax.random.normal(kxc, (B, num_cont), jnp.float32)
    Xe = jnp.stack(
        [jax.random.randint(jax.random.fold_in(kxe, j), (B,), 0, v)
         for j, v in enumerate(enum_vocab)], axis=1).astype(jnp.int32)

    d_in = num_cont + sum(enum_vocab)
    params = make_params(kp, d_in, nhidden_eac, out_features, num_out)
    packed, meta = pack_params(params, num_cont, enum_vocab, num_out)

    # --- small-batch run ---
    mu, sigma2 = eacnet_forward(Xc, Xe, packed, meta)
    jax.block_until_ready((mu, sigma2))

    mu_ref, sigma2_ref = eacnet_reference(Xc, Xe, enum_vocab, params)
    assert mu.shape == (B, num_out) and sigma2.shape == (B, num_out)
    assert jnp.allclose(mu, mu_ref, atol=5e-5, rtol=5e-5)
    assert jnp.allclose(sigma2, sigma2_ref, atol=5e-5, rtol=5e-5)
    assert bool(jnp.all(sigma2 >= 0.0))                  # Softplus output is non-negative

    # --- larger batch: exercises the multi-step parallel batch grid + padding ---
    B2 = 640
    k2c, k2e = jax.random.split(jax.random.PRNGKey(1))
    Xc2 = jax.random.normal(k2c, (B2, num_cont), jnp.float32)
    Xe2 = jnp.stack(
        [jax.random.randint(jax.random.fold_in(k2e, j), (B2,), 0, v)
         for j, v in enumerate(enum_vocab)], axis=1).astype(jnp.int32)
    mu2, sigma2_2 = eacnet_forward(Xc2, Xe2, packed, meta)
    jax.block_until_ready((mu2, sigma2_2))
    mu2_ref, sigma2_2_ref = eacnet_reference(Xc2, Xe2, enum_vocab, params)
    assert mu2.shape == (B2, num_out) and sigma2_2.shape == (B2, num_out)
    assert jnp.allclose(mu2, mu2_ref, atol=5e-5, rtol=5e-5)
    assert jnp.allclose(sigma2_2, sigma2_2_ref, atol=5e-5, rtol=5e-5)

    print("KERNEL_OK")
</pallas_src>

<mosaic_0001>
module attributes {stable_mosaic.version = 11 : i64} {
  func.func @_eacnet_kernel(%arg0: i32, %arg1: memref<8x256xf32, #tpu.memory_space<vmem>>, %arg2: memref<168x128xf32, #tpu.memory_space<vmem>>, %arg3: memref<4x256xf32, #tpu.memory_space<vmem>>) attributes {dimension_semantics = [#tpu.dimension_semantics<parallel>], iteration_bounds = array<i64: 1>, scalar_prefetch = 0 : i64, scratch_operands = 0 : i64, tpu.core_type = #tpu.core_type<tc>, window_params = [{transform_indices = @transform_0, window_bounds = array<i64: 8, 256>}, {pipeline_mode = #tpu.pipeline_mode<synchronous>, transform_indices = @transform_1, window_bounds = array<i64: 168, 128>}, {transform_indices = @transform_2, window_bounds = array<i64: 4, 256>}]} {
    %c0 = arith.constant 0 : index
    %c0_0 = arith.constant 0 : index
    %0 = vector.load %arg1[%c0, %c0_0] : memref<8x256xf32, #tpu.memory_space<vmem>>, vector<8x256xf32>
    %c0_1 = arith.constant 0 : index
    %c0_2 = arith.constant 0 : index
    %1 = vector.load %arg2[%c0_1, %c0_2] : memref<168x128xf32, #tpu.memory_space<vmem>>, vector<16x8xf32>
    %c0_3 = arith.constant 0 : index
    %c8 = arith.constant 8 : index
    %2 = vector.load %arg2[%c0_3, %c8] : memref<168x128xf32, #tpu.memory_space<vmem>>, vector<16x1xf32>
    %c16 = arith.constant 16 : index
    %c0_4 = arith.constant 0 : index
    %3 = vector.load %arg2[%c16, %c0_4] : memref<168x128xf32, #tpu.memory_space<vmem>>, vector<72x8xf32>
    %c88 = arith.constant 88 : index
    %c0_5 = arith.constant 0 : index
    %4 = vector.load %arg2[%c88, %c0_5] : memref<168x128xf32, #tpu.memory_space<vmem>>, vector<72x16xf32>
    %c160 = arith.constant 160 : index
    %c0_6 = arith.constant 0 : index
    %5 = vector.load %arg2[%c160, %c0_6] : memref<168x128xf32, #tpu.memory_space<vmem>>, vector<4x72xf32>
    %cst = arith.constant dense<0.000000e+00> : vector<16x256xf32>
    %6 = tpu.matmul %1, %0, %cst {dimension_numbers = #tpu.dot_dimension_numbers<[1], [0], [0], [1], [0, 0, 1, 1], [], []>} : vector<16x8xf32>, vector<8x256xf32>, vector<16x256xf32> -> vector<16x256xf32>
    %7 = vector.broadcast %2 : vector<16x1xf32> to vector<16x256xf32>
    %8 = arith.cmpf oeq, %6, %7 : vector<16x256xf32>
    %cst_7 = arith.constant 1.000000e+00 : f32
    %cst_8 = arith.constant 0.000000e+00 : f32
    %9 = vector.broadcast %cst_7 : f32 to vector<16x256xf32>
    %10 = vector.broadcast %cst_8 : f32 to vector<16x256xf32>
    %11 = arith.select %8, %9, %10 : vector<16x256xi1>, vector<16x256xf32>
    %cst_9 = arith.constant dense<0.000000e+00> : vector<72x256xf32>
    %12 = tpu.matmul %3, %0, %cst_9 {dimension_numbers = #tpu.dot_dimension_numbers<[1], [0], [0], [1], [0, 0, 1, 1], [], []>} : vector<72x8xf32>, vector<8x256xf32>, vector<72x256xf32> -> vector<72x256xf32>
    %cst_10 = arith.constant dense<0.000000e+00> : vector<72x256xf32>
    %13 = tpu.matmul %4, %11, %cst_10 {dimension_numbers = #tpu.dot_dimension_numbers<[1], [0], [0], [1], [0, 0, 1, 1], [], []>} : vector<72x16xf32>, vector<16x256xf32>, vector<72x256xf32> -> vector<72x256xf32>
    %14 = arith.addf %12, %13 : vector<72x256xf32>
    %cst_11 = arith.constant 0.000000e+00 : f32
    %15 = vector.broadcast %cst_11 : f32 to vector<72x256xf32>
    %16 = arith.maximumf %14, %15 : vector<72x256xf32>
    %cst_12 = arith.constant dense<0.000000e+00> : vector<4x256xf32>
    %17 = tpu.matmul %5, %16, %cst_12 {dimension_numbers = #tpu.dot_dimension_numbers<[1], [0], [0], [1], [0, 0, 1, 1], [], []>} : vector<4x72xf32>, vector<72x256xf32>, vector<4x256xf32> -> vector<4x256xf32>
    %cst_13 = arith.constant 0.000000e+00 : f32
    %18 = vector.broadcast %cst_13 : f32 to vector<4x256xf32>
    %19 = arith.maximumf %17, %18 : vector<4x256xf32>
    %20 = math.absf %17 : vector<4x256xf32>
    %cst_14 = arith.constant 0.000000e+00 : f32
    %21 = vector.broadcast %cst_14 : f32 to vector<4x256xf32>
    %22 = arith.subf %21, %20 : vector<4x256xf32>
    %23 = math.exp %22 : vector<4x256xf32>
    %24 = math.log1p %23 : vector<4x256xf32>
    %25 = arith.addf %19, %24 : vector<4x256xf32>
    %26 = tpu.iota {dimensions = array<i32: 0>} : vector<4x256xi32>
    %c2_i32 = arith.constant 2 : i32
    %27 = vector.broadcast %c2_i32 : i32 to vector<4x256xi32>
    %28 = arith.cmpi slt, %26, %27 : vector<4x256xi32>
    %29 = arith.select %28, %17, %25 : vector<4x256xi1>, vector<4x256xf32>
    %c0_15 = arith.constant 0 : index
    %c0_16 = arith.constant 0 : index
    %30 = vector.load %arg3[%c0_15, %c0_16] : memref<4x256xf32, #tpu.memory_space<vmem>>, vector<4x256xf32>
    tpu.vector_store %arg3[%c0_15, %c0_16], %29 {strides = array<i32>} : memref<4x256xf32, #tpu.memory_space<vmem>>, vector<4x256xf32>,
    return
  }
  func.func @transform_0(%arg0: i32) -> (i32, i32) {
    %c0_i32 = arith.constant 0 : i32
    %c0_i32_0 = arith.constant 0 : i32
    return %c0_i32, %arg0 : i32, i32
  }
  func.func @transform_1(%arg0: i32) -> (i32, i32) {
    %c0_i32 = arith.constant 0 : i32
    %c0_i32_0 = arith.constant 0 : i32
    %c0_i32_1 = arith.constant 0 : i32
    return %c0_i32, %c0_i32_0 : i32, i32
  }
  func.func @transform_2(%arg0: i32) -> (i32, i32) {
    %c0_i32 = arith.constant 0 : i32
    %c0_i32_0 = arith.constant 0 : i32
    return %c0_i32, %arg0 : i32, i32
  }
}

</mosaic_0001>

<bundles_post_ra>
// kernel: eacnet_forward.1
= control target key start
LH: loop header
LB: loop body
LE: loop exit
PB: predicated region body
PF: predicated region fallthrough
CT: control target
= control target key end

     0   :  { %7 = vsyncpa [#allocation3], 0  ;;  %s683_s9 = smov [#allocation2]   ;;  %s766_s0 = inlined_call_operand.vmem [shape: f32[8,256], index: 0, kind: input, shape index: {}]   ;;  %s767_s1 = inlined_call_operand.hbm [shape: f32[168,128], index: 1, kind: input, shape index: {}]   ;;  %s768_s2 = inlined_call_operand.vmem [shape: f32[4,256], index: 2, kind: output, shape index: {}]  }
   0x1   :  { %s15_s10 = sshll.u32 %s683_s9, 4  ;;  %s659_s13 = scalar_lea.hbm %s767_s1, 2688  ;;  %s16_s10 = int_to_ptr.vmem [resolvable:$true] %s15_s10 }
   0x2   :  { %p660_p0 = scmp.ne.s32.totalorder %s767_s1, %s659_s13  ;;  %p663_p1 = scmp.lt.u32.totalorder %s659_s13, %s767_s1 }
   0x4   :  { %p665_p2 = pnand %p663_p1, %p660_p0 }
   0x6   :  { %668 = shalt.err (!%p665_p2)
}
   0x7   :  { %s669_s18 = scalar_lea.vmem %s16_s10, 2688  ;;  %p674_p4 = scmp.lt.s32.totalorder %s16_s10, %s16_s10 }
   0x8   :  { %p670_p3 = scmp.ne.s32.totalorder %s16_s10, %s669_s18  ;;  %p675_p5 = scmp.lt.s32.totalorder %s669_s18, %s669_s18 }
   0xa   :  { %p676_p6 = por %p675_p5, %p674_p4 }
   0xc   :  { %p677_p7 = pnand %p676_p6, %p670_p3 }
   0xe   :  { %680 = shalt.err (!%p677_p7)
}
   0xf   :  { %s684_s19 = smov 128   ;;  %s685_s20 = smov 8  }
  0x10   :  { %21 = dma.hbm_to_vmem [thread:$0]  %s767_s1, 2688, %s16_s10, [#allocation3], %s684_s19, %s684_s19, %s685_s20  }
  0x11   :  { %681 = dma.done.wait [#allocation3], 2688  }
  0x12   :  { %682 = vsyncadd [#allocation3], 4294964608  ;;  %v686_v0 = vmov 0.0   ;;  %v687_v1 = vmov 8   ;;  %v26_v2 = vld [vmem:[%s766_s0 + $0x8] sm:$0xff]  ;;  %v25_v3 = vld [vmem:[%s766_s0] sm:$0xff] }
  0x13   :  { %119 = vmatprep.mubr.f32.mxu0 %v686_v0  ;;  %650 = vset.pattern.permute.xlu0 %v687_v1  ;;  %v27_v4 = vld [vmem:[#allocation2] sm:$0xff]  ;;  %vm48_vm0 = vcmask 64512   ;;  %v28_v5 = vld [vmem:[#allocation2 + $0x8] sm:$0xff]  ;;  %v688_v12 = vmov 1.0|1.0   ;;  %v46_v13 = vld [vmem:[#allocation2 + $0x98] sm:$0xff] }
  0x14   :  { %288 = vmatprep.mubr.f32.mxu1 %v686_v0  ;;  %55 = vmatprep.subr.mxu0 %v26_v2  ;;  %vm148_vm7 = vcmask 130048   ;;  %v38_v14 = vld [vmem:[#allocation2 + $0x58] sm:$0xff]  ;;  %v29_v15 = vld [vmem:[#allocation2 + $0x10] sm:$0xff]  ;;  %v39_v16 = vld [vmem:[#allocation2 + $0x60] sm:$0xff]  ;;  %vm459_vm8 = vcmask 588800  }
  0x15   :  { %133 = vperm.xlu0 %650, %v27_v4   ;;  %56 = vmatpush1.msra.mxu0 %v25_v3  ;;  %v30_v17 = vld [vmem:[#allocation2 + $0x18] sm:$0xff]  ;;  %v40_v18 = vld [vmem:[#allocation2 + $0x68] sm:$0xff]  ;;  %v31_v19 = vld [vmem:[#allocation2 + $0x20] sm:$0xff] }
  0x16   :  { %579 = vmatmul.mubr.msk.f32.vlgmr.msra.gmra.mrb[0].mxu0 %vm48_vm0, %v27_v4  ;;  %v41_v20 = vld [vmem:[#allocation2 + $0x70] sm:$0xff]  ;;  %v32_v21 = vld [vmem:[#allocation2 + $0x28] sm:$0xff]  ;;  %v42_v22 = vld [vmem:[#allocation2 + $0x78] sm:$0xff] }
  0x17   :  { %125 = vmatprep.mubr.f32.mxu0 %v686_v0  ;;  %v33_v23 = vld [vmem:[#allocation2 + $0x30] sm:$0xff]  ;;  %v43_v24 = vld [vmem:[#allocation2 + $0x80] sm:$0xff]  ;;  %v34_v25 = vld [vmem:[#allocation2 + $0x38] sm:$0xff] }
  0x18   :  { %v44_v26 = vld [vmem:[#allocation2 + $0x88] sm:$0xff]  ;;  %v35_v27 = vld [vmem:[#allocation2 + $0x40] sm:$0xff]  ;;  %v45_v28 = vld [vmem:[#allocation2 + $0x90] sm:$0xff] }
  0x19   :  { %137 = vperm.xlu0 %650, %v28_v5   ;;  %v36_v29 = vld [vmem:[#allocation2 + $0x48] sm:$0xff]  ;;  %v37_v30 = vld [vmem:[#allocation2 + $0x50] sm:$0xff] }
  0x1a   :  { %580 = vmatmul.mubr.msk.f32.gmra.mrb[2].mxu0 %vm48_vm0, %v28_v5 }
  0x1b   :  { %240 = vmatprep.mubr.f32.mxu0 %v686_v0 }
  0x94   :  { %v134_v6 = vpop.permute.xlu0 %133 }
  0x98   :  { %v138_v9 = vpop.permute.xlu0 %137 }
  0xe9   :  { %v121_v7 = vpop.f32.mrb[0].mxu0 }
  0xea   :  { %v123_v8 = vpop.f32.mrb[1].mxu0  ;;  %vm140_vm1 = vcmp.eq.f32.partialorder %v121_v7, %v134_v6 }
  0xeb   :  { %vm141_vm3 = vcmp.eq.f32.partialorder %v123_v8, %v134_v6 }
  0xed   :  { %v127_v10 = vpop.f32.mrb[2].mxu0 }
  0xee   :  { %vm142_vm2 = vcmp.eq.f32.partialorder %v127_v10, %v138_v9  ;;  %v129_v11 = vpop.f32.mrb[3].mxu0 }
  0xef   :  { %vm606_vm4 = vmpackc.low %vm142_vm2, %vm140_vm1  ;;  %vm143_vm5 = vcmp.eq.f32.partialorder %v129_v11, %v138_v9 }
  0xf0   :  { %vm604_vm6 = vmpackc.low %vm143_vm5, %vm141_vm3 }
  0xf1   :  { %605 = vmatprep.subr.msk.bf16.mxu0 %vm604_vm6, %v688_v12  ;;  %624 = vmatprep.subr.msk.bf16.mxu1 %vm604_vm6, %v688_v12 }
  0xf2   :  { %607 = vmatpush1.bf16.msk.msra.mxu0 %vm606_vm4, %v688_v12  ;;  %625 = vmatpush1.bf16.msk.msra.mxu1 %vm606_vm4, %v688_v12 }
  0xf3   :  { %322 = vmatprep.subr.mxu1 %v26_v2 }
  0xf5   :  { %593 = vmatmul.mubr.msk.f32.vlgmr.msra.gmra.mrb[0].mxu1 %vm148_vm7, %v46_v13  ;;  %585 = vmatmul.mubr.msk.f32.vlgmr.msra.gmra.mrb[4].mxu0 %vm148_vm7, %v38_v14 }
  0xf6   :  { %323 = vmatpush1.msra.mxu1 %v25_v3  ;;  %386 = vmatprep.mubr.f32.mxu1 %v686_v0 }
  0xf7   :  { %246 = vmatprep.mubr.f32.mxu0 %v686_v0 }
  0xf9   :  { %594 = vmatmul.mubr.msk.f32.vlgmr.msra.gmra.mrb[2].mxu1 %vm48_vm0, %v29_v15  ;;  %586 = vmatmul.mubr.msk.f32.gmra.mrb[6].mxu0 %vm148_vm7, %v39_v16 }
  0xfa   :  { %392 = vmatprep.mubr.f32.mxu1 %v686_v0  ;;  %252 = vmatprep.mubr.f32.mxu0 %v686_v0 }
  0xfd   :  { %595 = vmatmul.mubr.msk.f32.gmra.mrb[4].mxu1 %vm48_vm0, %v30_v17  ;;  %587 = vmatmul.mubr.msk.f32.gmra.mrb[8].mxu0 %vm148_vm7, %v40_v18 }
  0xfe   :  { %398 = vmatprep.mubr.f32.mxu1 %v686_v0  ;;  %258 = vmatprep.mubr.f32.mxu0 %v686_v0 }
 0x101   :  { %596 = vmatmul.mubr.msk.f32.gmra.mrb[6].mxu1 %vm48_vm0, %v31_v19  ;;  %588 = vmatmul.mubr.msk.f32.gmra.mrb[10].mxu0 %vm148_vm7, %v41_v20 }
 0x102   :  { %404 = vmatprep.mubr.f32.mxu1 %v686_v0  ;;  %264 = vmatprep.mubr.f32.mxu0 %v686_v0 }
 0x105   :  { %597 = vmatmul.mubr.msk.f32.gmra.mrb[8].mxu1 %vm48_vm0, %v32_v21  ;;  %589 = vmatmul.mubr.msk.f32.gmra.mrb[12].mxu0 %vm148_vm7, %v42_v22 }
 0x106   :  { %410 = vmatprep.mubr.f32.mxu1 %v686_v0  ;;  %270 = vmatprep.mubr.f32.mxu0 %v686_v0 }
 0x109   :  { %598 = vmatmul.mubr.msk.f32.gmra.mrb[10].mxu1 %vm48_vm0, %v33_v23  ;;  %590 = vmatmul.mubr.msk.f32.gmra.mrb[14].mxu0 %vm148_vm7, %v43_v24 }
 0x10a   :  { %416 = vmatprep.mubr.f32.mxu1 %v686_v0  ;;  %276 = vmatprep.mubr.f32.mxu0 %v686_v0 }
 0x10d   :  { %599 = vmatmul.mubr.msk.f32.gmra.mrb[12].mxu1 %vm48_vm0, %v34_v25  ;;  %591 = vmatmul.mubr.msk.f32.gmra.mrb[16].mxu0 %vm148_vm7, %v44_v26 }
 0x10e   :  { %422 = vmatprep.mubr.f32.mxu1 %v686_v0  ;;  %282 = vmatprep.mubr.f32.mxu0 %v686_v0 }
 0x111   :  { %600 = vmatmul.mubr.msk.f32.gmra.mrb[14].mxu1 %vm48_vm0, %v35_v27  ;;  %592 = vmatmul.mubr.msk.f32.gmra.mrb[18].mxu0 %vm148_vm7, %v45_v28 }
 0x112   :  { %428 = vmatprep.mubr.f32.mxu1 %v686_v0  ;;  %527 = vmatprep.mubr.f32.mxu0 %v686_v0 }
 0x115   :  { %601 = vmatmul.mubr.msk.f32.gmra.mrb[16].mxu1 %vm48_vm0, %v36_v29 }
 0x116   :  { %434 = vmatprep.mubr.f32.mxu1 %v686_v0 }
 0x119   :  { %602 = vmatmul.mubr.msk.f32.gmra.mrb[0].mxu1 %vm48_vm0, %v37_v30 }
 0x1c8   :  { %v242_v31 = vpop.f32.mrb[4].mxu0 }
 0x1c9   :  { %v244_v32 = vpop.f32.mrb[5].mxu0 }
 0x1cc   :  { %v388_v33 = vpop.f32.mrb[2].mxu1  ;;  %v248_v34 = vpop.f32.mrb[6].mxu0 }
 0x1cd   :  { %v389_v35 = vadd.f32 %v388_v33, %v242_v31  ;;  %v390_v36 = vpop.f32.mrb[3].mxu1  ;;  %v250_v37 = vpop.f32.mrb[7].mxu0 }
 0x1ce   :  { %v391_v38 = vadd.f32 %v390_v36, %v244_v32 }
 0x1cf   :  { %v441_v45 = vmax.f32 %v389_v35, 0.0 }
 0x1d0   :  { %v394_v39 = vpop.f32.mrb[4].mxu1  ;;  %v254_v40 = vpop.f32.mrb[8].mxu0  ;;  %v442_v47 = vmax.f32 %v391_v38, 0.0 }
 0x1d1   :  { %v395_v41 = vadd.f32 %v394_v39, %v248_v34  ;;  %v396_v42 = vpop.f32.mrb[5].mxu1  ;;  %v256_v43 = vpop.f32.mrb[9].mxu0 }
 0x1d2   :  { %v397_v44 = vadd.f32 %v396_v42, %v250_v37 }
 0x1d3   :  { %v443_v46 = vmax.f32 %v395_v41, 0.0 }
 0x1d4   :  { %v444_v48 = vmax.f32 %v397_v44, 0.0  ;;  %v400_v49 = vpop.f32.mrb[6].mxu1  ;;  %v260_v50 = vpop.f32.mrb[10].mxu0 }
 0x1d5   :  { %v610_v51 = vpack.c.bf16 %v443_v46, %v441_v45  ;;  %v401_v52 = vadd.f32 %v400_v49, %v254_v40  ;;  %v402_v53 = vpop.f32.mrb[7].mxu1  ;;  %v262_v54 = vpop.f32.mrb[11].mxu0 }
 0x1d6   :  { %v608_v55 = vpack.c.bf16 %v444_v48, %v442_v47  ;;  %v403_v56 = vadd.f32 %v402_v53, %v256_v43  ;;  %v47_v43 = vld [vmem:[#allocation2 + $0xa0] sm:$0xf] }
 0x1d7   :  { %v445_v63 = vmax.f32 %v401_v52, 0.0 }
 0x1d8   :  { %v406_v57 = vpop.f32.mrb[8].mxu1  ;;  %609 = vmatprep.subr.bf16.mxu0 %v608_v55  ;;  %v266_v58 = vpop.f32.mrb[12].mxu0  ;;  %v446_v1 = vmax.f32 %v403_v56, 0.0 }
 0x1d9   :  { %v407_v59 = vadd.f32 %v406_v57, %v260_v50  ;;  %v408_v60 = vpop.f32.mrb[9].mxu1  ;;  %611 = vmatpush1.bf16.msra.mxu0 %v610_v51  ;;  %v268_v61 = vpop.f32.mrb[13].mxu0 }
 0x1da   :  { %v409_v62 = vadd.f32 %v408_v60, %v262_v54 }
 0x1db   :  { %v447_v0 = vmax.f32 %v407_v59, 0.0 }
 0x1dc   :  { %v448_v2 = vmax.f32 %v409_v62, 0.0  ;;  %v412_v3 = vpop.f32.mrb[10].mxu1  ;;  %v272_v4 = vpop.f32.mrb[14].mxu0 }
 0x1dd   :  { %v614_v5 = vpack.c.bf16 %v447_v0, %v445_v63  ;;  %v413_v6 = vadd.f32 %v412_v3, %v266_v58  ;;  %v414_v7 = vpop.f32.mrb[11].mxu1  ;;  %v274_v8 = vpop.f32.mrb[15].mxu0  ;;  %v564_v58 = vlaneseq }
 0x1de   :  { %v612_v9 = vpack.c.bf16 %v448_v2, %v446_v1  ;;  %v415_v10 = vadd.f32 %v414_v7, %v268_v61 }
 0x1df   :  { %v449_v17 = vmax.f32 %v413_v6, 0.0  ;;  %v565_v62 = vshrl.u32 %v564_v58, 7 }
 0x1e0   :  { %v418_v11 = vpop.f32.mrb[12].mxu1  ;;  %613 = vmatprep.subr.bf16.mxu0 %v612_v9  ;;  %v278_v12 = vpop.f32.mrb[16].mxu0  ;;  %v450_v19 = vmax.f32 %v415_v10, 0.0 }
 0x1e1   :  { %v419_v13 = vadd.f32 %v418_v11, %v272_v4  ;;  %v420_v14 = vpop.f32.mrb[13].mxu1  ;;  %615 = vmatpush1.bf16.msra.mxu0 %v614_v5  ;;  %v280_v15 = vpop.f32.mrb[17].mxu0  ;;  %vm566_vm10 = vcmp.lt.s32.totalorder %v565_v62, 2 }
 0x1e2   :  { %v421_v16 = vadd.f32 %v420_v14, %v274_v8 }
 0x1e3   :  { %v451_v18 = vmax.f32 %v419_v13, 0.0 }
 0x1e4   :  { %v452_v20 = vmax.f32 %v421_v16, 0.0  ;;  %v424_v21 = vpop.f32.mrb[14].mxu1  ;;  %v284_v22 = vpop.f32.mrb[18].mxu0 }
 0x1e5   :  { %v618_v23 = vpack.c.bf16 %v451_v18, %v449_v17  ;;  %v425_v24 = vadd.f32 %v424_v21, %v278_v12  ;;  %v426_v25 = vpop.f32.mrb[15].mxu1  ;;  %v286_v26 = vpop.f32.mrb[19].mxu0 }
 0x1e6   :  { %v616_v27 = vpack.c.bf16 %v452_v20, %v450_v19  ;;  %v427_v28 = vadd.f32 %v426_v25, %v280_v15 }
 0x1e7   :  { %v453_v33 = vmax.f32 %v425_v24, 0.0 }
 0x1e8   :  { %v430_v29 = vpop.f32.mrb[16].mxu1  ;;  %617 = vmatprep.subr.bf16.mxu0 %v616_v27  ;;  %v454_v35 = vmax.f32 %v427_v28, 0.0 }
 0x1e9   :  { %v431_v30 = vadd.f32 %v430_v29, %v284_v22  ;;  %v432_v31 = vpop.f32.mrb[17].mxu1  ;;  %619 = vmatpush1.bf16.msra.mxu0 %v618_v23 }
 0x1ea   :  { %v433_v32 = vadd.f32 %v432_v31, %v286_v26 }
 0x1eb   :  { %v455_v34 = vmax.f32 %v431_v30, 0.0 }
 0x1ec   :  { %v456_v36 = vmax.f32 %v433_v32, 0.0  ;;  %v436_v37 = vpop.f32.mrb[0].mxu1 }
 0x1ed   :  { %v622_v38 = vpack.c.bf16 %v455_v34, %v453_v33  ;;  %v438_v39 = vpop.f32.mrb[1].mxu1  ;;  %v457_v42 = vmax.f32 %v436_v37, 0.0 }
 0x1ee   :  { %v620_v40 = vpack.c.bf16 %v456_v36, %v454_v35  ;;  %v458_v41 = vmax.f32 %v438_v39, 0.0 }
 0x1f0   :  { %621 = vmatprep.subr.bf16.mxu0 %v620_v40 }
 0x1f1   :  { %623 = vmatpush1.bf16.msra.mxu0 %v622_v38 }
 0x1f2   :  { %479 = vmatprep.subr.mxu0 %v458_v41 }
 0x1f5   :  { %480 = vmatpush1.msra.mxu0 %v457_v42 }
 0x1f6   :  { %603 = vmatmul.mubr.msk.f32.vlgmr.msra.gmra.mrb[20].mxu0 %vm459_vm8, %v47_v43 }
 0x2c9   :  { %v529_v44 = vpop.f32.mrb[20].mxu0 }
 0x2ca   :  { %v536_v45 = vand.u32 2147483647, %v529_v44  ;;  %v531_v46 = vpop.f32.mrb[21].mxu0  ;;  %v534_v4 = vmax.f32 %v529_v44, 0.0 }
 0x2cb   :  { %v537_v47 = vand.u32 2147483647, %v531_v46  ;;  %v535_v8 = vmax.f32 %v531_v46, 0.0 }
 0x2cc   :  { %v538_v48 = vsub.f32 0.0, %v536_v45 }
 0x2cd   :  { %v539_v49 = vsub.f32 0.0, %v537_v47 }
 0x2ce   :  { %v540_v50 = vmul.f32 1.442695, %v538_v48 }
 0x2cf   :  { %v542_v51 = vmul.f32 1.442695, %v539_v49 }
 0x2d0   :  { %651 = vpow2.f32 %v540_v50 }
 0x2d1   :  { %653 = vpow2.f32 %v542_v51 }
 0x2da   :  { %v652_v52 = vpop.eup %651 }
 0x2db   :  { %v654_v53 = vpop.eup %653  ;;  %v544_v54 = vadd.f32 1.0, %v652_v52  ;;  %v547_v56 = vmul.f32 -0.5, %v652_v52  ;;  %v550_v60 = vand.u32 2147483647, %v652_v52 }
 0x2dc   :  { %v553_v55 = vadd.f32 1.0, %v654_v53  ;;  %v556_v57 = vmul.f32 -0.5, %v654_v53  ;;  %v559_v63 = vand.u32 2147483647, %v654_v53 }
 0x2dd   :  { %655 = vlog2.f32 %v544_v54  ;;  %v548_v59 = vadd.f32 1.0, %v547_v56  ;;  %vm551_vm9 = vcmp.lt.f32.partialorder %v550_v60, 0.0004427343 }
 0x2de   :  { %657 = vlog2.f32 %v553_v55  ;;  %v557_v61 = vadd.f32 1.0, %v556_v57  ;;  %vm560_vm11 = vcmp.lt.f32.partialorder %v559_v63, 0.0004427343 }
 0x2df   :  { %v549_v3 = vmul.f32 %v652_v52, %v548_v59 }
 0x2e0   :  { %v558_v6 = vmul.f32 %v654_v53, %v557_v61 }
 0x2e7   :  { %v656_v0 = vpop.eup %655 }
 0x2e8   :  { %v658_v1 = vpop.eup %657  ;;  %v546_v2 = vmul.f32 0.6931472, %v656_v0 }
 0x2e9   :  { %v555_v5 = vmul.f32 0.6931472, %v658_v1 }
 0x2ea   :  { %v552_v7 = vsel %vm551_vm9, %v549_v3, %v546_v2 }
 0x2eb   :  { %v562_v9 = vadd.f32 %v552_v7, %v534_v4  ;;  %v561_v10 = vsel %vm560_vm11, %v558_v6, %v555_v5 }
 0x2ec   :  { %v563_v11 = vadd.f32 %v561_v10, %v535_v8 }
 0x2ed   :  { %v567_v12 = vsel %vm566_vm10, %v529_v44, %v562_v9 }
 0x2ee   :  { %v568_v13 = vsel %vm566_vm10, %v531_v46, %v563_v11 }
 0x2ef   :  { %v571_v14 = vcombine.low %v567_v12, %v568_v13 }
 0x2f1   :  { %573 = vst [vmem:[%s768_s2] sm:$0xff] %v571_v14 }
 0x2f2   :  { %578 = vsyncpa [#allocation3], 1 }

</bundles_post_ra>
